<compile_context>
chip_gen: v6e
topology: v6e:2x2x1
jax: 0.10.0
libtpu: 0.0.40
codegen_flags: <defaults>
</compile_context>

<pallas_src>
import jax
import jax.numpy as jnp
from jax.experimental import pallas as pl
from jax.experimental.pallas import tpu as pltpu


def _hpc_kernel(v1_ref, v2_ref, d1_ref, d2_ref, o_ref):
    # v1_ref / v2_ref / o_ref blocks: (TB, L);  d1_ref / d2_ref blocks: (1, L)
    # (1, L) row broadcasts over the TB batch rows -> plain vmul + vadd, no XLU.
    o_ref[...] = v1_ref[...] * d1_ref[...] + v2_ref[...] * d2_ref[...]


def _choose_batch_tile(B, row_bytes, target_block_bytes=1 << 20):
    """Rows per grid step: ~1 MiB blocks, multiple of 8 (sublane), <= B."""
    tb = max(1, target_block_bytes // max(1, row_bytes))
    if tb >= B:
        return B                      # single full-extent block (always legal)
    tb = (tb // 8) * 8
    if tb < 8:
        return B if B <= 8 else 8     # keep sublane-divisible unless B itself is tiny
    return tb


def hadamard_product_connect(v1, v2, p1, p2, *, force_pallas=None,
                             min_bytes_for_pallas=1 << 20):
    """out[i,k,j] = v1[i,k,j]*p1[k,k] + v2[i,k,j]*p2[k,k]"""
    assert v1.shape == v2.shape
    B, K, J = v1.shape
    assert p1.shape == (K, K) and p2.shape == (K, K)

    d1 = jnp.diagonal(p1).astype(v1.dtype)
    d2 = jnp.diagonal(p2).astype(v2.dtype)

    total_bytes = 3 * B * K * J * v1.dtype.itemsize  # v1 + v2 + out traffic
    use_pallas = force_pallas if force_pallas is not None else (
        total_bytes >= min_bytes_for_pallas)

    if not use_pallas:
        # Tiny problem: XLA fuses this into one trivial kernel; Pallas launch
        # overhead would dominate.
        return v1 * d1[None, :, None] + v2 * d2[None, :, None]

    # ---- Lane-dense layout: collapse (K, J) into a single row of L lanes ----
    L = K * J
    v1f = v1.reshape(B, L)
    v2f = v2.reshape(B, L)
    # Repeated diag rows: d_row[k*J + j] == diag[k]  (matches the flattening).
    d1_row = jnp.repeat(d1, J).reshape(1, L)
    d2_row = jnp.repeat(d2, J).reshape(1, L)

    row_bytes = L * v1.dtype.itemsize
    tb = _choose_batch_tile(B, row_bytes)
    grid = (pl.cdiv(B, tb),)

    out_flat = pl.pallas_call(
        _hpc_kernel,
        out_shape=jax.ShapeDtypeStruct((B, L), v1.dtype),
        grid_spec=pltpu.PrefetchScalarGridSpec(
            num_scalar_prefetch=0,
            grid=grid,
            in_specs=[
                pl.BlockSpec((tb, L), lambda b: (b, 0)),  # v1 tile (tb rows)
                pl.BlockSpec((tb, L), lambda b: (b, 0)),  # v2 tile
                pl.BlockSpec((1, L), lambda b: (0, 0)),   # repeated diag(p1), resident
                pl.BlockSpec((1, L), lambda b: (0, 0)),   # repeated diag(p2), resident
            ],
            out_specs=pl.BlockSpec((tb, L), lambda b: (b, 0)),
        ),
        compiler_params=pltpu.CompilerParams(
            dimension_semantics=("parallel",),   # shards batch grid across TCs on v7x
        ),
    )(v1f, v2f, d1_row, d2_row)

    return out_flat.reshape(B, K, J)


if __name__ == "__main__":
    B, K, J = 16, 8, 16   # batch, nodes, feature dim (K*J = 128 -> lane-dense)

    key = jax.random.PRNGKey(0)
    k1, k2, k3, k4 = jax.random.split(key, 4)

    # Deterministic "parameters" (torch.randn(nodes, nodes) equivalents).
    p1 = jax.random.normal(k1, (K, K), dtype=jnp.float32)
    p2 = jax.random.normal(k2, (K, K), dtype=jnp.float32)

    # Inputs (i, k, j).
    v1 = jax.random.normal(k3, (B, K, J), dtype=jnp.float32)
    v2 = jax.random.normal(k4, (B, K, J), dtype=jnp.float32)

    # Force the Pallas path so the kernel itself is exercised on this small demo.
    out = jax.block_until_ready(
        hadamard_product_connect(v1, v2, p1, p2, force_pallas=True))

    ref = v1 * jnp.diagonal(p1)[None, :, None] + v2 * jnp.diagonal(p2)[None, :, None]
    assert out.shape == (B, K, J)
    assert jnp.allclose(out, ref, atol=1e-6), "pallas path mismatch vs reference"

    # Auto path: tiny input falls back to plain jnp (launch overhead not worth it).
    out_small = jax.block_until_ready(
        hadamard_product_connect(v1[:2], v2[:2], p1, p2))
    assert jnp.allclose(out_small, ref[:2], atol=1e-6), "fallback path mismatch"

    print("KERNEL_OK")
</pallas_src>

<mosaic_0001>
module attributes {stable_mosaic.version = 11 : i64} {
  func.func @_hpc_kernel(%arg0: i32, %arg1: memref<16x128xf32, #tpu.memory_space<vmem>>, %arg2: memref<16x128xf32, #tpu.memory_space<vmem>>, %arg3: memref<1x128xf32, #tpu.memory_space<vmem>>, %arg4: memref<1x128xf32, #tpu.memory_space<vmem>>, %arg5: memref<16x128xf32, #tpu.memory_space<vmem>>) attributes {dimension_semantics = [#tpu.dimension_semantics<parallel>], iteration_bounds = array<i64: 1>, scalar_prefetch = 0 : i64, scratch_operands = 0 : i64, tpu.core_type = #tpu.core_type<tc>, window_params = [{transform_indices = @transform_0, window_bounds = array<i64: 16, 128>}, {transform_indices = @transform_1, window_bounds = array<i64: 16, 128>}, {pipeline_mode = #tpu.pipeline_mode<synchronous>, transform_indices = @transform_2, window_bounds = array<i64: 1, 128>}, {pipeline_mode = #tpu.pipeline_mode<synchronous>, transform_indices = @transform_3, window_bounds = array<i64: 1, 128>}, {transform_indices = @transform_4, window_bounds = array<i64: 16, 128>}]} {
    %c0 = arith.constant 0 : index
    %c0_0 = arith.constant 0 : index
    %0 = vector.load %arg1[%c0, %c0_0] : memref<16x128xf32, #tpu.memory_space<vmem>>, vector<16x128xf32>
    %c0_1 = arith.constant 0 : index
    %c0_2 = arith.constant 0 : index
    %1 = vector.load %arg3[%c0_1, %c0_2] : memref<1x128xf32, #tpu.memory_space<vmem>>, vector<1x128xf32>
    %2 = vector.broadcast %1 : vector<1x128xf32> to vector<16x128xf32>
    %3 = arith.mulf %0, %2 : vector<16x128xf32>
    %c0_3 = arith.constant 0 : index
    %c0_4 = arith.constant 0 : index
    %4 = vector.load %arg2[%c0_3, %c0_4] : memref<16x128xf32, #tpu.memory_space<vmem>>, vector<16x128xf32>
    %c0_5 = arith.constant 0 : index
    %c0_6 = arith.constant 0 : index
    %5 = vector.load %arg4[%c0_5, %c0_6] : memref<1x128xf32, #tpu.memory_space<vmem>>, vector<1x128xf32>
    %6 = vector.broadcast %5 : vector<1x128xf32> to vector<16x128xf32>
    %7 = arith.mulf %4, %6 : vector<16x128xf32>
    %8 = arith.addf %3, %7 : vector<16x128xf32>
    %c0_7 = arith.constant 0 : index
    %c0_8 = arith.constant 0 : index
    %9 = vector.load %arg5[%c0_7, %c0_8] : memref<16x128xf32, #tpu.memory_space<vmem>>, vector<16x128xf32>
    tpu.vector_store %arg5[%c0_7, %c0_8], %8 {strides = array<i32>} : memref<16x128xf32, #tpu.memory_space<vmem>>, vector<16x128xf32>,
    return
  }
  func.func @transform_0(%arg0: i32) -> (i32, i32) {
    %c0_i32 = arith.constant 0 : i32
    %c0_i32_0 = arith.constant 0 : i32
    return %arg0, %c0_i32 : i32, i32
  }
  func.func @transform_1(%arg0: i32) -> (i32, i32) {
    %c0_i32 = arith.constant 0 : i32
    %c0_i32_0 = arith.constant 0 : i32
    return %arg0, %c0_i32 : i32, i32
  }
  func.func @transform_2(%arg0: i32) -> (i32, i32) {
    %c0_i32 = arith.constant 0 : i32
    %c0_i32_0 = arith.constant 0 : i32
    %c0_i32_1 = arith.constant 0 : i32
    return %c0_i32, %c0_i32_0 : i32, i32
  }
  func.func @transform_3(%arg0: i32) -> (i32, i32) {
    %c0_i32 = arith.constant 0 : i32
    %c0_i32_0 = arith.constant 0 : i32
    %c0_i32_1 = arith.constant 0 : i32
    return %c0_i32, %c0_i32_0 : i32, i32
  }
  func.func @transform_4(%arg0: i32) -> (i32, i32) {
    %c0_i32 = arith.constant 0 : i32
    %c0_i32_0 = arith.constant 0 : i32
    return %arg0, %c0_i32 : i32, i32
  }
}

</mosaic_0001>

<bundles_post_ra>
// kernel: tpu_custom_call.1
= control target key start
LH: loop header
LB: loop body
LE: loop exit
PB: predicated region body
PF: predicated region fallthrough
CT: control target
= control target key end

     0   :  { %9 = vsyncpa [#allocation3], 0  ;;  %s217_s0 = inlined_call_operand.hbm [shape: f32[16,128], index: 0, kind: input, shape index: {}]   ;;  %s218_s1 = inlined_call_operand.hbm [shape: f32[16,128], index: 1, kind: input, shape index: {}]   ;;  %s219_s2 = inlined_call_operand.vmem [shape: f32[1,128], index: 2, kind: input, shape index: {}]   ;;  %s220_s3 = inlined_call_operand.vmem [shape: f32[1,128], index: 3, kind: input, shape index: {}]   ;;  %s221_s4 = inlined_call_operand.hbm [shape: f32[16,128], index: 4, kind: output, shape index: {}]  }
   0x1   :  { %10 = vsyncpa [#allocation6], 0 }
   0x2   :  { %11 = vsyncpa [#allocation4], 0  ;;  %s163_s15 = smov [#allocation2]  }
   0x3   :  { %s17_s16 = sshll.u32 %s163_s15, 4  ;;  %s18_s16 = int_to_ptr.vmem [resolvable:$true] %s17_s16 }
   0x4   :  { %s105_s17 = scalar_lea.vmem %s18_s16, 256  ;;  %p110_p1 = scmp.lt.s32.totalorder %s18_s16, %s18_s16 }
   0x5   :  { %p106_p0 = scmp.ne.s32.totalorder %s18_s16, %s105_s17  ;;  %p111_p2 = scmp.lt.s32.totalorder %s105_s17, %s105_s17 }
   0x7   :  { %p112_p3 = por %p111_p2, %p110_p1 }
   0x9   :  { %p113_p4 = pnand %p112_p3, %p106_p0 }
   0xb   :  { %116 = shalt.err (!%p113_p4)
}
   0xc   :  { %s164_s18 = smov 128   ;;  %s165_s19 = smov 8  }
   0xd   :  { %23 = dma.hbm_to_vmem [thread:$0]  %s217_s0, 256, %s18_s16, [#allocation3], %s164_s18, %s164_s18, %s165_s19  }
   0xe   :  { %s166_s22 = smov [#allocation5]  }
   0xf   :  { %s29_s23 = sshll.u32 %s166_s22, 4  ;;  %s30_s23 = int_to_ptr.vmem [resolvable:$true] %s29_s23 }
  0x10   :  { %s125_s24 = scalar_lea.vmem %s30_s23, 256  ;;  %p130_p6 = scmp.lt.s32.totalorder %s30_s23, %s30_s23 }
  0x11   :  { %p126_p5 = scmp.ne.s32.totalorder %s30_s23, %s125_s24  ;;  %p131_p7 = scmp.lt.s32.totalorder %s125_s24, %s125_s24 }
  0x13   :  { %p132_p8 = por %p131_p7, %p130_p6 }
  0x15   :  { %p133_p9 = pnand %p132_p8, %p126_p5 }
  0x17   :  { %136 = shalt.err (!%p133_p9)
}
  0x18   :  { %35 = dma.hbm_to_vmem [thread:$0]  %s218_s1, 256, %s30_s23, [#allocation6], %s164_s18, %s164_s18, %s165_s19  }
  0x19   :  { %157 = dma.done.wait [#allocation3], 256  }
  0x1a   :  { %158 = vsyncadd [#allocation3], 4294967040 }
  0x1b   :  { %159 = dma.done.wait [#allocation6], 256  }
  0x1c   :  { %160 = vsyncadd [#allocation6], 4294967040  ;;  %v46_v0 = vld [vmem:[#allocation2] sm:$0xff]  ;;  %v57_v2 = vld [vmem:[#allocation5] sm:$0xff]  ;;  %s167_s30 = smov [#allocation7]  }
  0x1d   :  { %v90_v1 = vld [vmem:[%s219_s2] ss:$0 sm:$0xff]  ;;  %v47_v5 = vld [vmem:[#allocation2 + $0x8] sm:$0xff]  ;;  %v58_v6 = vld [vmem:[#allocation5 + $0x8] sm:$0xff]  ;;  %s77_s5 = sshll.u32 %s167_s30, 4  ;;  %s78_s5 = int_to_ptr.vmem [resolvable:$true] %s77_s5 }
  0x1e   :  { %v55_v3 = vmul.f32 %v90_v1, %v46_v0  ;;  %v91_v4 = vld [vmem:[%s220_s3] ss:$0 sm:$0xff]  ;;  %v56_v8 = vmul.f32 %v90_v1, %v47_v5  ;;  %s137_s1 = scalar_lea.vmem %s78_s5, 256  ;;  %p142_p11 = scmp.lt.s32.totalorder %s78_s5, %s78_s5 }
  0x1f   :  { %v66_v7 = vmul.f32 %v91_v4, %v57_v2  ;;  %v67_v9 = vmul.f32 %v91_v4, %v58_v6  ;;  %p138_p10 = scmp.ne.s32.totalorder %s78_s5, %s137_s1  ;;  %p143_p12 = scmp.lt.s32.totalorder %s137_s1, %s137_s1 }
  0x21   :  { %v68_v10 = vadd.f32 %v66_v7, %v55_v3  ;;  %v69_v11 = vadd.f32 %v67_v9, %v56_v8  ;;  %p144_p13 = por %p143_p12, %p142_p11 }
  0x23   :  { %70 = vst [vmem:[#allocation7] sm:$0xff] %v68_v10  ;;  %71 = vst [vmem:[#allocation7 + $0x8] sm:$0xff] %v69_v11  ;;  %p145_p0 = pnand %p144_p13, %p138_p10 }
  0x25   :  { %148 = shalt.err (!%p145_p0)
}
  0x26   :  { %83 = dma.vmem_to_hbm [thread:$0]  %s78_s5, 256, %s221_s4, [#allocation4], %s164_s18, %s164_s18, %s165_s19  }
  0x27   :  { %161 = dma.done.wait [#allocation4], 256  }
  0x28   :  { %162 = vsyncadd [#allocation4], 4294967040 }
  0x29   :  { %87 = vsyncpa [#allocation3], 1 }
  0x2a   :  { %88 = vsyncpa [#allocation6], 1 }
  0x2b   :  { %89 = vsyncpa [#allocation4], 1 }

</bundles_post_ra>
